<compile_context>
chip_gen: v5e
topology: v5e:2x2
jax: 0.10.0
libtpu: 0.0.40
codegen_flags: <defaults>
</compile_context>

<pallas_src>
import jax
import jax.numpy as jnp
from jax.experimental import pallas as pl
from jax.experimental.pallas import tpu as pltpu


def _pa_kernel(x_ref, w1_ref, b1_ref, w2_ref, b2_ref, o_ref):
    """Pixel attention for one (C, T) lane-dense tile.

    x_ref/o_ref : (C, T)   channel on sublanes, spatial on lanes
    w1_ref      : (Ch, C)  conv1 weight, in x's dtype
    b1_ref      : (Ch, 1)  f32
    w2_ref      : (Ch, 1)  f32 (conv2 weight as a column)
    b2_ref      : (1, 1)   f32
    """
    x = x_ref[...]                                   # native dtype (no f32 up-cast)

    # conv1 (1x1): tiny MXU matmul with f32 accumulation, + bias, ReLU.
    h = jnp.dot(w1_ref[...], x, preferred_element_type=jnp.float32) + b1_ref[...]
    h = jnp.maximum(h, 0.0)                          # (Ch, T) f32

    # conv2 (1x1) has a single output channel: broadcast-mul + sublane reduce
    # (VPU/XLU) instead of a width-1 MXU matmul.
    logit = jnp.sum(h * w2_ref[...], axis=0, keepdims=True) + b2_ref[...]   # (1, T)
    att = jax.nn.sigmoid(logit)                                             # (1, T) f32

    # Elementwise scale, attention broadcast over the channel (sublane) axis.
    o_ref[...] = x * att.astype(x.dtype)


def _pick_tile_hw(HW, C, itemsize, N):
    """VMEM-budgeted lane-dense spatial tile (multiple of 128)."""
    # Budget for the pipelined x/out buffers (worst case 3 in + 3 out buffers):
    # keep them ~24 MiB so the kernel fits every generation's VMEM (v7x has
    # only 64 MiB physical / 32 MiB scoped default) with headroom for weights
    # and compiler scratch.
    BUF_BUDGET = 24 * 1024 * 1024
    N_BUFS = 6
    t = BUF_BUDGET // (N_BUFS * C * itemsize)
    t = max(128, (t // 128) * 128)
    t = min(t, 32768)                         # diminishing returns past ~MiB-scale tiles

    # Never larger than the lane-padded spatial extent.
    hw_pad = pl.cdiv(HW, 128) * 128
    t = min(t, hw_pad)

    # Keep >= ~8 grid steps when possible: shards across both v7x TensorCores
    # and keeps the software pipeline busy even for small batch sizes.
    MIN_STEPS = 8
    if N * pl.cdiv(HW, t) < MIN_STEPS:
        want_blocks = pl.cdiv(MIN_STEPS, N)
        t_small = pl.cdiv(pl.cdiv(HW, want_blocks), 128) * 128
        t = max(128, min(t, t_small))
    return t


def pa_layer(x_nchw, w1, b1, w2, b2, *, tile_hw=None):
    """PALayer forward: out = x * sigmoid(conv2(relu(conv1(x)))).

    x_nchw : (N, C, H, W)
    w1     : (C//8, C)   conv1 weight in PyTorch (out, in) layout (1x1 squeezed)
    b1     : (C//8,)     conv1 bias
    w2     : (1, C//8)   conv2 weight in PyTorch (out, in) layout (1x1 squeezed)
    b2     : (1,)        conv2 bias
    """
    N, C, H, W = x_nchw.shape
    Ch = w1.shape[0]
    HW = H * W
    itemsize = jnp.dtype(x_nchw.dtype).itemsize

    # Free reshape -- no HBM transpose.
    x_flat = x_nchw.reshape(N, C, HW)

    t = tile_hw if tile_hw is not None else _pick_tile_hw(HW, C, itemsize, N)
    num_hw_blocks = pl.cdiv(HW, t)

    # Prepare weights once in the wrapper (nothing is cast per grid step).
    w1_k = w1.astype(x_nchw.dtype)                       # MXU takes x's dtype natively
    b1_k = b1.astype(jnp.float32).reshape(Ch, 1)
    w2_k = w2.astype(jnp.float32).reshape(Ch, 1)         # (1, Ch) -> column (Ch, 1)
    b2_k = b2.astype(jnp.float32).reshape(1, 1)

    # Deeper buffering on the streamed tensors when the grid is long enough.
    pipe_kwargs = {"pipeline_mode": pl.Buffered(3)} if num_hw_blocks >= 4 else {}
    x_spec = pl.BlockSpec((pl.Squeezed(), C, t), lambda n, j: (n, 0, j), **pipe_kwargs)
    o_spec = pl.BlockSpec((pl.Squeezed(), C, t), lambda n, j: (n, 0, j), **pipe_kwargs)

    # Advisory cost hint: this op is HBM-bandwidth bound (read + write of x).
    P = N * HW
    cost = pl.CostEstimate(
        flops=2 * P * C * Ch + 4 * P * Ch + 2 * P * C,
        transcendentals=P,                               # one sigmoid exp per pixel
        bytes_accessed=2 * N * C * HW * itemsize,
    )

    out_flat = pl.pallas_call(
        _pa_kernel,
        out_shape=jax.ShapeDtypeStruct((N, C, HW), x_nchw.dtype),
        grid_spec=pltpu.PrefetchScalarGridSpec(
            num_scalar_prefetch=0,
            grid=(N, num_hw_blocks),
            in_specs=[
                x_spec,                                             # x tile (C, t)
                pl.BlockSpec((Ch, C), lambda n, j: (0, 0)),         # w1 (resident)
                pl.BlockSpec((Ch, 1), lambda n, j: (0, 0)),         # b1
                pl.BlockSpec((Ch, 1), lambda n, j: (0, 0)),         # w2 column
                pl.BlockSpec((1, 1), lambda n, j: (0, 0)),          # b2
            ],
            out_specs=o_spec,
        ),
        compiler_params=pltpu.CompilerParams(
            dimension_semantics=("parallel", "parallel"),
            vmem_limit_bytes=48 * 1024 * 1024,
        ),
        cost_estimate=cost,
    )(x_flat, w1_k, b1_k, w2_k, b2_k)

    return out_flat.reshape(N, C, H, W)


def _reference(x, w1, b1, w2, b2):
    """Pure-JAX reference (same math as the PyTorch module)."""
    xf = x.astype(jnp.float32)
    h = jnp.einsum("oc,nchw->nohw", w1.astype(jnp.float32), xf)
    h = jnp.maximum(h + b1.astype(jnp.float32)[None, :, None, None], 0.0)
    logit = jnp.einsum("oc,nchw->nohw", w2.astype(jnp.float32), h)
    att = jax.nn.sigmoid(logit + b2.astype(jnp.float32)[None, :, None, None])
    return (xf * att).astype(x.dtype)


if __name__ == "__main__":
    key = jax.random.PRNGKey(0)
    k_x, k_w1, k_b1, k_w2, k_b2 = jax.random.split(key, 5)

    N, C, H, W = 2, 32, 16, 16            # channel=32 -> hidden = channel//8 = 4
    Ch = C // 8

    x = jax.random.normal(k_x, (N, C, H, W), dtype=jnp.float32)
    # PyTorch Conv2d 1x1 weights with kernel dims squeezed: (out_ch, in_ch).
    w1 = jax.random.normal(k_w1, (Ch, C), dtype=jnp.float32) * 0.1
    b1 = jax.random.normal(k_b1, (Ch,), dtype=jnp.float32) * 0.1
    w2 = jax.random.normal(k_w2, (1, Ch), dtype=jnp.float32) * 0.1
    b2 = jax.random.normal(k_b2, (1,), dtype=jnp.float32) * 0.1

    out = jax.block_until_ready(pa_layer(x, w1, b1, w2, b2))
    ref = _reference(x, w1, b1, w2, b2)
    assert jnp.allclose(out, ref, atol=1e-5, rtol=1e-5), "mismatch vs reference (case 1)"

    # Second shape: H*W = 400 is NOT a multiple of 128 -> exercises the padded
    # edge block and the deeper (Buffered(3)) pipelining path.
    H2, W2 = 20, 20
    x2 = jax.random.normal(k_x, (N, C, H2, W2), dtype=jnp.float32)
    out2 = jax.block_until_ready(pa_layer(x2, w1, b1, w2, b2))
    ref2 = _reference(x2, w1, b1, w2, b2)
    assert jnp.allclose(out2, ref2, atol=1e-5, rtol=1e-5), "mismatch vs reference (case 2)"

    print("KERNEL_OK")
</pallas_src>

<mosaic_0001>
module attributes {stable_mosaic.version = 11 : i64} {
  func.func @_pa_kernel(%arg0: i32, %arg1: i32, %arg2: memref<1x32x128xf32, #tpu.memory_space<vmem>>, %arg3: memref<4x32xf32, #tpu.memory_space<vmem>>, %arg4: memref<4x1xf32, #tpu.memory_space<vmem>>, %arg5: memref<4x1xf32, #tpu.memory_space<vmem>>, %arg6: memref<1x1xf32, #tpu.memory_space<vmem>>, %arg7: memref<1x32x128xf32, #tpu.memory_space<vmem>>) attributes {dimension_semantics = [#tpu.dimension_semantics<parallel>, #tpu.dimension_semantics<parallel>], iteration_bounds = array<i64: 2, 2>, scalar_prefetch = 0 : i64, scratch_operands = 0 : i64, tpu.core_type = #tpu.core_type<tc>, window_params = [{transform_indices = @transform_0, window_bounds = array<i64: 1, 32, 128>}, {pipeline_mode = #tpu.pipeline_mode<synchronous>, transform_indices = @transform_1, window_bounds = array<i64: 4, 32>}, {pipeline_mode = #tpu.pipeline_mode<synchronous>, transform_indices = @transform_2, window_bounds = array<i64: 4, 1>}, {pipeline_mode = #tpu.pipeline_mode<synchronous>, transform_indices = @transform_3, window_bounds = array<i64: 4, 1>}, {pipeline_mode = #tpu.pipeline_mode<synchronous>, transform_indices = @transform_4, window_bounds = array<i64: 1, 1>}, {transform_indices = @transform_5, window_bounds = array<i64: 1, 32, 128>}]} {
    %c0 = arith.constant 0 : index
    %c0_0 = arith.constant 0 : index
    %c0_1 = arith.constant 0 : index
    %0 = vector.load %arg2[%c0, %c0_0, %c0_1] : memref<1x32x128xf32, #tpu.memory_space<vmem>>, vector<1x32x128xf32>
    %1 = vector.shape_cast %0 : vector<1x32x128xf32> to vector<32x128xf32>
    %c0_2 = arith.constant 0 : index
    %c0_3 = arith.constant 0 : index
    %2 = vector.load %arg3[%c0_2, %c0_3] : memref<4x32xf32, #tpu.memory_space<vmem>>, vector<4x32xf32>
    %cst = arith.constant dense<0.000000e+00> : vector<4x128xf32>
    %3 = tpu.matmul %2, %1, %cst {dimension_numbers = #tpu.dot_dimension_numbers<[1], [0], [0], [1], [0, 0, 1, 1], [], []>} : vector<4x32xf32>, vector<32x128xf32>, vector<4x128xf32> -> vector<4x128xf32>
    %c0_4 = arith.constant 0 : index
    %c0_5 = arith.constant 0 : index
    %4 = vector.load %arg4[%c0_4, %c0_5] : memref<4x1xf32, #tpu.memory_space<vmem>>, vector<4x1xf32>
    %5 = vector.broadcast %4 : vector<4x1xf32> to vector<4x128xf32>
    %6 = arith.addf %3, %5 : vector<4x128xf32>
    %cst_6 = arith.constant 0.000000e+00 : f32
    %7 = vector.broadcast %cst_6 : f32 to vector<4x128xf32>
    %8 = arith.maximumf %6, %7 : vector<4x128xf32>
    %c0_7 = arith.constant 0 : index
    %c0_8 = arith.constant 0 : index
    %9 = vector.load %arg5[%c0_7, %c0_8] : memref<4x1xf32, #tpu.memory_space<vmem>>, vector<4x1xf32>
    %10 = vector.broadcast %9 : vector<4x1xf32> to vector<4x128xf32>
    %11 = arith.mulf %8, %10 : vector<4x128xf32>
    %cst_9 = arith.constant dense<0.000000e+00> : vector<128xf32>
    %12 = vector.multi_reduction <add>, %11, %cst_9 [0] : vector<4x128xf32> to vector<128xf32>
    %13 = vector.shape_cast %12 : vector<128xf32> to vector<1x128xf32>
    %c0_10 = arith.constant 0 : index
    %c0_11 = arith.constant 0 : index
    %14 = vector.load %arg6[%c0_10, %c0_11] : memref<1x1xf32, #tpu.memory_space<vmem>>, vector<1x1xf32>
    %15 = vector.broadcast %14 : vector<1x1xf32> to vector<1x128xf32>
    %16 = arith.addf %13, %15 : vector<1x128xf32>
    %17 = arith.negf %16 : vector<1x128xf32>
    %18 = math.exp %17 : vector<1x128xf32>
    %cst_12 = arith.constant 1.000000e+00 : f32
    %19 = vector.broadcast %cst_12 : f32 to vector<1x128xf32>
    %20 = arith.addf %19, %18 : vector<1x128xf32>
    %21 = arith.divf %19, %20 : vector<1x128xf32>
    %22 = vector.broadcast %21 : vector<1x128xf32> to vector<32x128xf32>
    %23 = arith.mulf %1, %22 : vector<32x128xf32>
    %c0_13 = arith.constant 0 : index
    %c0_14 = arith.constant 0 : index
    %c0_15 = arith.constant 0 : index
    %24 = vector.load %arg7[%c0_13, %c0_14, %c0_15] : memref<1x32x128xf32, #tpu.memory_space<vmem>>, vector<1x32x128xf32>
    %25 = vector.shape_cast %24 : vector<1x32x128xf32> to vector<32x128xf32>
    %26 = vector.shape_cast %23 : vector<32x128xf32> to vector<1x32x128xf32>
    tpu.vector_store %arg7[%c0_13, %c0_14, %c0_15], %26 {strides = array<i32>} : memref<1x32x128xf32, #tpu.memory_space<vmem>>, vector<1x32x128xf32>,
    return
  }
  func.func @transform_0(%arg0: i32, %arg1: i32) -> (i32, i32, i32) {
    %c0_i32 = arith.constant 0 : i32
    %c0_i32_0 = arith.constant 0 : i32
    return %arg0, %c0_i32, %arg1 : i32, i32, i32
  }
  func.func @transform_1(%arg0: i32, %arg1: i32) -> (i32, i32) {
    %c0_i32 = arith.constant 0 : i32
    %c0_i32_0 = arith.constant 0 : i32
    %c0_i32_1 = arith.constant 0 : i32
    return %c0_i32, %c0_i32_0 : i32, i32
  }
  func.func @transform_2(%arg0: i32, %arg1: i32) -> (i32, i32) {
    %c0_i32 = arith.constant 0 : i32
    %c0_i32_0 = arith.constant 0 : i32
    %c0_i32_1 = arith.constant 0 : i32
    return %c0_i32, %c0_i32_0 : i32, i32
  }
  func.func @transform_3(%arg0: i32, %arg1: i32) -> (i32, i32) {
    %c0_i32 = arith.constant 0 : i32
    %c0_i32_0 = arith.constant 0 : i32
    %c0_i32_1 = arith.constant 0 : i32
    return %c0_i32, %c0_i32_0 : i32, i32
  }
  func.func @transform_4(%arg0: i32, %arg1: i32) -> (i32, i32) {
    %c0_i32 = arith.constant 0 : i32
    %c0_i32_0 = arith.constant 0 : i32
    %c0_i32_1 = arith.constant 0 : i32
    return %c0_i32, %c0_i32_0 : i32, i32
  }
  func.func @transform_5(%arg0: i32, %arg1: i32) -> (i32, i32, i32) {
    %c0_i32 = arith.constant 0 : i32
    %c0_i32_0 = arith.constant 0 : i32
    return %arg0, %c0_i32, %arg1 : i32, i32, i32
  }
}

</mosaic_0001>

<bundles_post_ra>
// kernel: tpu_custom_call.1
= control target key start
LH: loop header
LB: loop body
LE: loop exit
PB: predicated region body
PF: predicated region fallthrough
CT: control target
= control target key end

     0   :  { %s892_s0 = inlined_call_operand.hbm [shape: f32[2,32,256], index: 0, kind: input, shape index: {}]   ;;  %s893_s1 = inlined_call_operand.vmem [shape: f32[4,32], index: 1, kind: input, shape index: {}]   ;;  %s894_s2 = inlined_call_operand.vmem [shape: f32[4,1], index: 2, kind: input, shape index: {}]   ;;  %s895_s3 = inlined_call_operand.vmem [shape: f32[4,1], index: 3, kind: input, shape index: {}]   ;;  %s896_s4 = inlined_call_operand.<no memory space> [shape: f32[1,1], index: 4, kind: input, shape index: {}]   ;;  %s897_s5 = inlined_call_operand.hbm [shape: f32[2,32,256], index: 5, kind: output, shape index: {}]  }
   0x1   :  { %v10_v0 = vstv %s896_s4 }
   0x2   :  { %11 = vst [vmem:[#allocation2] sm:$0x1] %v10_v0 }
   0x3   :  { %12 = vsyncpa [#allocation4], 0 }
   0x4   :  { %14 = vsyncpa [#allocation4 + $0x1], 0 }
   0x5   :  { %15 = vsyncpa [#allocation5], 0 }
   0x6   :  { %17 = vsyncpa [#allocation5 + $0x1], 0  ;;  %s733_s20 = smov 0   ;;  %s735_s21 = smov 0  }
   0x7   :  { %s737_s22 = smov 0   ;;  %s739_s23 = smov 0  }
   0x8   :  { %s741_s24 = smov 0   ;;  %s743_s25 = smov 0  }
   0x9   :  { %s745_s26 = smov 0   ;;  %s747_s4 = smov 0  }
   0xa LB: > { %901 = sst [smem:[#allocation9_spill]] %s671_s22  ;;  %s455_s27 = sadd.s32 4294967295, %s691_s4   ;;  %s691_s4 = sphi %s747_s4, %s23_s4   ;;  %s687_s26 = sphi %s745_s26, %s918_s26   ;;  %s683_s25 = sphi %s743_s25, %s917_s25   ;;  %s679_s24 = sphi %s741_s24, %s916_s24   ;;  %s675_s23 = sphi %s739_s23, %s915_s23   ;;  %s671_s22 = sphi %s737_s22, %s910_s22   ;;  %s667_s21 = sphi %s735_s21, %s914_s21   ;;  %s663_s20 = sphi %s733_s20, %s913_s20  }
   0xb   : > { %s456_s28 = sadd.s32 4294967294, %s691_s4   ;;  %s32_s29 = sadd.s32 1, %s683_s25 }
   0xc   : > { %s35_s30 = sadd.s32 1, %s687_s26  ;;  %p33_p0 = scmp.ge.s32.totalorder %s32_s29, 2 }
   0xd   : > { %s44_s6 = sadd.s32 1, %s671_s22  ;;  %p51_p1 = scmp.ne.s32.totalorder %s671_s22, %s667_s21 }
   0xe   : > { %p52_p2 = scmp.eq.s32.totalorder %s691_s4, 0  ;;  %s920_s29 = smov (%p33_p0, %s32_s29), 0 }
   0xf   : > { %902 = sst [smem:[#allocation10_spill]] %s920_s29  ;;  %s922_s30 = smov (!%p33_p0, %s35_s30), %s687_s26 }
  0x10   : > { %s40_s7 = ssub.s32 %s683_s25, %s920_s29  ;;  %p786_p3 = por %p52_p2, %p51_p1 }
  0x11   : > { %p37_p4 = scmp.ge.s32.totalorder %s922_s30, 2  ;;  %p57_p5 = scmp.ne.s32.totalorder %s667_s21, %s663_s20 }
  0x12   : > { %p58_p6 = scmp.eq.s32.totalorder %s455_s27, 0  ;;  %p167_p7 = scmp.eq.s32.totalorder %s455_s27, 3 }
  0x13   : > { %s924_s30 = smov (%p37_p4, %s922_s30), 0  ;;  %p173_p10 = scmp.eq.s32.totalorder %s456_s28, 3 }
  0x14   : > { %904 = sst [smem:[#allocation11_spill]] %s924_s30  ;;  %p794_p8 = por %p58_p6, %p57_p5 }
  0x15   : > { %p798_p9 = por %p167_p7, %p51_p1  ;;  %s39_s11 = ssub.s32 %s687_s26, %s924_s30 }
  0x16   : > { %s41_s12 = sor.u32 %s40_s7, %s39_s11  ;;  %p804_p12 = por %p173_p10, %p57_p5 }
  0x17   : > { %p42_p11 = scmp.eq.s32.totalorder %s41_s12, 0  ;;  %p484_p13 = scmp.lt.s32.totalorder %s691_s4, 4 }
  0x18   : > { %s205_s14 = sand.u32 1, %s671_s22   ;;  %s460_s17 = sshll.u32 %s687_s26, 3 }
  0x19   : > { %s811_s15 = scalar_select %p42_p11, %s671_s22, %s44_s6  }
  0x1a   : > { %s459_s16 = sshll.u32 %s205_s14, 5  ;;  %s213_s18 = sadd.s32 %s683_s25, %s460_s17 }
  0x1b   : > { %908 = sst [smem:[#allocation12_spill]] %s811_s15  ;;  %s209_s19 = scalar_lea.vmem [#allocation3], %s459_s16 }
  0x1c   : > { %s218_s27 = sshll.u32 %s209_s19, 4  ;;  %s461_s30 = sshll.u32 %s213_s18, 3  ;;  %s219_s27 = int_to_ptr.vmem [resolvable:$true] %s218_s27 }
  0x1d   : > { %s215_s11 = scalar_lea.hbm %s892_s0, %s461_s30  ;;  %p477_p0 = pnand %p484_p13, %p786_p3 }
  0x1e   : > { %s216_s12 = sshll.u32 %s215_s11, 4  ;;  %s206_s29 = scalar_lea.sflag [#allocation4], %s205_s14  ;;  %s217_s12 = int_to_ptr.hbm [resolvable:$true] %s216_s12 }
  0x1f   : > { %s693_s6 = smov 256   ;;  %s694_s15 = smov 128  }
  0x20   : > { %s695_s22 = smov 8   ;;  %p462_p1 = scmp.ge.s32.totalorder %s691_s4, 1 }
  0x21   : > { %479 = dma.hbm_to_vmem [thread:$0]  (!%p477_p0), %s217_s12, 512, %s219_s27, %s206_s29, %s693_s6, %s694_s15, %s695_s22  }
  0x22   : > { %p226_p2 = scmp.lt.s32.totalorder %s691_s4, 5 }
  0x24   : > { %p227_p4 = pnand %p462_p1, %p226_p2 }
  0x25   : > { %s823_s16 = sand.u32 (!%p227_p4), 1, %s667_s21  }
  0x26   : > { %230 = sbr.rel (%p227_p4) target bundleno = 238 (0xee), region = 40  ;;  %s463_s30 = sshll.u32 (!%p227_p4), %s823_s16, 5 }
  0x27   : > { %s233_s8 = scalar_lea.sflag (!%p227_p4), [#allocation4], %s823_s16  ;;  %s236_s17 = scalar_lea.vmem (!%p227_p4), [#allocation3], %s463_s30 }
  0x2b   : > { %654 = dma.done.wait (%p794_p8), %s233_s8, 512  }
  0x2c   : > { %656 = vsyncadd (%p794_p8), %s233_s8, 4294966784  ;;  %v696_v1 = vmov 0   ;;  %v833_v2 = vld [vmem:[%s236_s17 + $0x18] sm:$0xff]  ;;  %v266_v3 = vld [vmem:[%s236_s17 + $0x10] sm:$0xff]  ;;  %vm275_vm0 = vcmask 261120   ;;  %vm307_vm1 = vcmask 1043456  }
  0x2d   : > { %557 = vset.pattern.permute.xlu0 %v696_v1  ;;  %558 = vset.pattern.permute.xlu1 %v696_v1  ;;  %v269_v4 = vld [vmem:[%s894_s2] sm:$0xf]  ;;  %v265_v5 = vld [vmem:[%s236_s17 + $0x8] sm:$0xff]  ;;  %s468_s19 = sshll.u32 %s679_s24, 3  ;;  %s263_s24 = scalar_lea.vmem [#allocation6], %s463_s30 }
  0x2e   : > { %291 = vmatpush.msra.mxu0 %v833_v2  ;;  %272 = vperm.xlu0 %557, %v269_v4   ;;  %v315_v6 = vld [vmem:[#allocation2] sm:$0x1]  ;;  %v264_v7 = vld [vmem:[%s236_s17] sm:$0xff]  ;;  %s361_s27 = sadd.s32 %s675_s23, %s468_s19  ;;  %s364_s23 = sshll.u32 %s263_s24, 4  ;;  %s365_s23 = int_to_ptr.vmem [resolvable:$true] %s364_s23 }
  0x2f   : > { %318 = vperm.xlu1 %558, %v315_v6   ;;  %v268_v8 = vld [vmem:[%s893_s1] sm:$0xf]  ;;  %s469_s28 = sshll.u32 %s361_s27, 3  ;;  %s351_s8 = scalar_lea.sflag [#allocation5], %s823_s16 }
  0x30   : > { %292 = vmatpush.msra.mxu0 %v266_v3  ;;  %v300_v9 = vld [vmem:[%s895_s3] sm:$0xf]  ;;  %s363_s12 = scalar_lea.hbm %s897_s5, %s469_s28  ;;  %s613_s9 = scalar_lea.hbm %s897_s5, 128 }
  0x31   : > { %s366_s6 = sshll.u32 %s363_s12, 4  ;;  %s367_s6 = int_to_ptr.hbm [resolvable:$true] %s366_s6 }
  0x32   : > { %293 = vmatpush.msra.mxu0 %v265_v5  ;;  %s607_s17 = sshra.s32 %s367_s6, 4  ;;  %s608_s17 = int_to_ptr.hbm [resolvable:$true] %s607_s17 }
  0x33   : > { %s609_s22 = scalar_lea.hbm %s608_s17, 32  ;;  %p614_p7 = scmp.lt.s32.totalorder %s608_s17, %s897_s5 }
  0x34   : > { %294 = vmatpush.msra.mxu0 %v264_v7  ;;  %p610_p3 = scmp.ne.s32.totalorder %s608_s17, %s609_s22  ;;  %p615_p8 = scmp.lt.s32.totalorder %s613_s9, %s609_s22 }
  0x35   : > { %465 = vmatmul.msk.f32.vlgmr.msra.gmra.mxu0 %vm275_vm0, %v268_v8 }
  0x36   : > { %303 = vperm.xlu0 %557, %v300_v9   ;;  %p611_p5 = pnand %p610_p3, %p798_p9  ;;  %p616_p10 = por %p615_p8, %p614_p7 }
  0x38   : > { %p612_p6 = pneg %p611_p5 }
  0x3a   : > { %p617_p11 = pnand %p616_p10, %p612_p6 }
  0xa0   : > { %v273_v10 = vpop.permute.xlu0 %272 }
  0xa1   : > { %v319_v20 = vpop.permute.xlu1 %318 }
  0xa2   : > { %v321_v23 = vperm.slane %v319_v20, 0 }
  0xa8   : > { %v304_v14 = vpop.permute.xlu0 %303 }
  0xb2   : > { %v296_v11 = vpop.f32.mrf.mxu0 }
  0xb3   : > { %v297_v12 = vadd.f32 %v296_v11, %v273_v10 }
  0xb5   : > { %v299_v13 = vmax.f32 %v297_v12, 0.0 }
  0xb7   : > { %v306_v15 = vmul.f32 %v304_v14, %v299_v13 }
  0xb9   : > { %v308_v16 = vsel %vm307_vm1, %v306_v15, 0.0 }
  0xba   : > { %v309_v17 = vrot.slane %v308_v16, 4 }
  0xbc   : > { %v310_v18 = vadd.f32 %v309_v17, %v308_v16 }
  0xbe   : > { %v311_v19 = vrot.slane %v310_v18, 2 }
  0xc0   : > { %v312_v21 = vadd.f32 %v311_v19, %v310_v18 }
  0xc2   : > { %v313_v22 = vrot.slane %v312_v21, 1 }
  0xc4   : > { %v314_v24 = vadd.f32 %v313_v22, %v312_v21 }
  0xc6   : > { %v322_v25 = vadd.f32 %v321_v23, %v314_v24 }
  0xc8   : > { %v466_v26 = vmul.f32 -1.442695, %v322_v25 }
  0xca   : > { %559 = vpow2.f32 %v466_v26 }
  0xd0   : > { %v560_v27 = vpop.eup %559 }
  0xd1   : > { %v326_v28 = vadd.f32 1.0, %v560_v27 }
  0xd3   : > { %561 = vrcp.f32 %v326_v28  ;;  %v338_v32 = vand.u32 2147483648, %v326_v28  ;;  %v336_v34 = vand.u32 2147483647, %v326_v28  ;;  %vm332_vm3 = vweird.f32 %v326_v28 }
  0xd5   : > { %v339_v36 = vor.u32 1.1754944e-38, %v338_v32  ;;  %vm337_vm5 = vcmp.eq.f32.partialorder %v336_v34, 8.507059e+37 }
  0xd9   : > { %v562_v29 = vpop.eup %561 }
  0xda   : > { %v328_v30 = vmul.f32 %v562_v29, %v326_v28  ;;  %vm333_vm2 = vweird.f32 %v562_v29 }
  0xdb   : > { %vm334_vm4 = vmor %vm332_vm3, %vm333_vm2 }
  0xdc   : > { %v329_v31 = vsub.f32 1.0, %v328_v30 }
  0xde   : > { %v330_v33 = vmul.f32 %v562_v29, %v329_v31 }
  0xe0   : > { %v331_v35 = vadd.f32 %v562_v29, %v330_v33 }
  0xe2   : > { %v335_v37 = vsel %vm334_vm4, %v562_v29, %v331_v35 }
  0xe3   : > { %v340_v38 = vsel %vm337_vm5, %v339_v36, %v335_v37 }
  0xe4   : > { %v342_v39 = vmul.f32 %v340_v38, %v264_v7  ;;  %v343_v40 = vmul.f32 %v340_v38, %v265_v5  ;;  %v344_v41 = vmul.f32 %v340_v38, %v266_v3  ;;  %v345_v42 = vmul.f32 %v340_v38, %v833_v2 }
  0xe6   : > { %346 = vst [vmem:[%s263_s24] sm:$0xff] %v342_v39 }
  0xe7   : > { %347 = vst [vmem:[%s263_s24 + $0x8] sm:$0xff] %v343_v40 }
  0xe8   : > { %348 = vst [vmem:[%s263_s24 + $0x10] sm:$0xff] %v344_v41 }
  0xe9   : > { %349 = vst [vmem:[%s263_s24 + $0x18] sm:$0xff] %v345_v42 }
  0xea   : > { %620 = shalt.err (!%p617_p11)
}
  0xeb   : > { %s697_s16 = smov 128   ;;  %s698_s18 = smov 256  }
  0xec   : > { %s699_s19 = smov 8  }
  0xed   : > { %474 = dma.vmem_to_hbm [thread:$0]  (%p798_p9), %s365_s23, 512, %s367_s6, %s351_s8, %s697_s16, %s698_s18, %s699_s19  }
  0xee PF: > { %p485_p13 = scmp.ge.s32.totalorder %s691_s4, 2  ;;  %s381_s27 = sand.u32 1, %s663_s20  }
  0xef   : > { %s382_s28 = scalar_lea.sflag [#allocation5], %s381_s27 }
  0xf0   : > { %p481_p0 = pnand %p485_p13, %p804_p12 }
  0xf2   : > { %p482_p1 = pneg %p481_p0 }
  0xf4   : > { %658 = dma.done.wait (%p482_p1), %s382_s28, 512  }
  0xf5   : > { %660 = vsyncadd (%p482_p1), %s382_s28, 4294966784  ;;  %s23_s4 = sadd.s32 1, %s691_s4   ;;  %s909_s7 = sld [smem:[#allocation9_spill]] }
  0xf6   : > { %p20_p2 = scmp.ge.s32.totalorder %s23_s4, 6   ;;  %s910_s22 = sld [smem:[#allocation12_spill]] }
  0xf7   : > { %s911_s10 = sld [smem:[#allocation10_spill]]  ;;  %s913_s20 = smov %s667_s21 }
  0xf8   : > { %s912_s11 = sld [smem:[#allocation11_spill]]  ;;  %s915_s23 = smov %s683_s25 }
  0xf9   : > { %s916_s24 = smov %s687_s26 }
  0xfa   :  { %22 = sbr.rel (!%p20_p2) target bundleno = 10 (0xa), region = 85 }
  0xfb   : > { %s914_s21 = smov %s909_s7 }
  0xfd   : > { %s917_s25 = smov %s911_s10 }
  0xfe   : > { %s918_s26 = smov %s912_s11 }
  0xff   :  { %388 = vsyncpa [#allocation4], 1 }
 0x100   :  { %390 = vsyncpa [#allocation4 + $0x1], 1 }
 0x101   :  { %391 = vsyncpa [#allocation5], 1 }
 0x102   :  { %393 = vsyncpa [#allocation5 + $0x1], 1 }

</bundles_post_ra>
